<compile_context>
chip_gen: v5e
topology: v5e:2x2
jax: 0.10.0
libtpu: 0.0.40
codegen_flags: <defaults>
</compile_context>

<pallas_src>
import functools

import jax
import jax.numpy as jnp
from jax.experimental import pallas as pl
from jax.experimental.pallas import tpu as pltpu


def _round_up(x, m):
    return ((x + m - 1) // m) * m


def _vmem_capacity_bytes():
    """Best-effort physical VMEM query; conservative (v7x, 64 MiB) fallback."""
    try:
        return int(pltpu.get_tpu_info().vmem_capacity_bytes)
    except Exception:
        return 64 * 2**20


def _quantize_int8_per_column(w):
    """Symmetric per-output-column int8 quantization. Returns (int8 codes, f32 scales)."""
    amax = jnp.max(jnp.abs(w), axis=0, keepdims=True)
    scale = jnp.where(amax > 0.0, amax / 127.0, 1.0).astype(jnp.float32)
    w_q = jnp.clip(jnp.round(w / scale), -127.0, 127.0).astype(jnp.int8)
    return w_q, scale


# --------------- kernel 1: attention + LSTM step (runs once, grid=(1,)) ---------------
def attention_lstm_kernel(
    emb_ref, h_ref, c_ref, enc_ref, mask_ref,
    wa_h_ref, wa_e_ref, ba_ref,
    w_gates_ref, b_gates_ref,
    cat_ref, h_out_ref, c_out_ref,
):
    B, H = h_ref.shape
    S = mask_ref.shape[1]
    cdt = emb_ref.dtype                                    # MXU operand dtype (bf16 prod)
    approx = jnp.dtype(cdt) == jnp.dtype(jnp.bfloat16)     # approx reciprocal only in bf16

    emb = emb_ref[...]                                     # [B, E]      cdt
    h = h_ref[...]                                         # [B, H]      f32
    c = c_ref[...]                                         # [B, H]      f32
    enc = enc_ref[...]                                     # [B*S, 2He]  cdt (batch-major)
    h_c = h.astype(cdt)

    # attention energies: one flat [B*S, 2He] @ [2He, H] MXU matmul
    enc_part = jnp.dot(enc, wa_e_ref[...], preferred_element_type=jnp.float32)
    h_part = jnp.dot(h_c, wa_h_ref[...], preferred_element_type=jnp.float32)
    energy = jnp.tanh(enc_part.reshape(B, S, H) + h_part[:, None, :] + ba_ref[...])
    # TODO(synk): on v6e/v7x the tanh/sigmoid transcendentals could run in bf16 (2x EUP).
    scores = jnp.sum(energy, axis=2)                                      # [B, S]
    scores = jnp.where(mask_ref[...] == 0.0, jnp.float32(-1e9), scores)

    # masked softmax (max-subtracted -> all-masked rows degrade to uniform, no NaN)
    m = jnp.max(scores, axis=1, keepdims=True)
    p = jnp.exp(scores - m)
    attn = p * pl.reciprocal(jnp.sum(p, axis=1, keepdims=True), approx=approx)

    # weighted encoder rep as ONE small MXU matmul: block-diagonal [B, B*S] attention
    # matrix @ flat encoder outputs.  attn is cast to the compute dtype BEFORE the
    # tile/where so the intermediate is half-width.
    # TODO(synk): for B >= ~32 or long S switch to the VPU-multiply + reduce form to
    # avoid the O(B^2*S*2He) redundant MXU work (prologue-only cost).
    attn_c = attn.astype(cdt)
    col = jax.lax.broadcasted_iota(jnp.int32, (B, B * S), 1)
    row = jax.lax.broadcasted_iota(jnp.int32, (B, B * S), 0)
    in_block = (col >= row * S) & (col < (row + 1) * S)
    tiled = jnp.tile(attn_c, (1, B))
    a_blk = jnp.where(in_block, tiled, jnp.zeros_like(tiled))
    weighted = jnp.dot(a_blk, enc, preferred_element_type=jnp.float32)    # [B, 2He] f32
    w_c = weighted.astype(cdt)

    # single fused LSTM-gate matmul: [emb | weighted | h] @ W_gates  (PyTorch i,f,g,o)
    x_cat = jnp.concatenate([emb, w_c, h_c], axis=1)                      # [B, E+2He+H]
    gates = (jnp.dot(x_cat, w_gates_ref[...], preferred_element_type=jnp.float32)
             + b_gates_ref[...])                                          # [B, 4H]
    i_g = jax.nn.sigmoid(gates[:, 0 * H:1 * H])
    f_g = jax.nn.sigmoid(gates[:, 1 * H:2 * H])
    g_g = jnp.tanh(gates[:, 2 * H:3 * H])
    o_g = jax.nn.sigmoid(gates[:, 3 * H:4 * H])
    c_new = f_g * c + i_g * g_g
    h_new = o_g * jnp.tanh(c_new)

    h_out_ref[...] = h_new
    c_out_ref[...] = c_new
    # concat order must match the stacked output weight [wo_h; wo_w; wo_e]
    cat_ref[...] = jnp.concatenate([h_new.astype(cdt), w_c, emb], axis=1)


# --------------- kernel 2: vocab-tiled output projection (parallel grid) ---------------
def vocab_proj_kernel(cat_ref, w_ref, scale_ref, bo_ref, logits_ref):
    # w_ref is int8 (quantized storage) or the compute dtype; the dequant cast is cheap
    # VPU work hidden under this tile's HBM DMA (int8 codes are exact in bf16).
    w = w_ref[...].astype(cat_ref.dtype)
    acc = jnp.dot(cat_ref[...], w, preferred_element_type=jnp.float32)
    logits_ref[...] = acc * scale_ref[...] + bo_ref[...]


@functools.partial(jax.jit, static_argnames=("compute_dtype", "quantize_out", "v_tile"))
def decoder_forward(params, input_tokens, decoder_hidden, cell, encoder_outputs, mask,
                    *, compute_dtype=jnp.bfloat16, quantize_out=None, v_tile=None):
    """Mirrors Decoder.forward.

    input_tokens [B] int32, decoder_hidden/cell [1,B,H], encoder_outputs [S,B,2He],
    mask [B,S].  Returns (logits [B,V], decoder_hidden [1,B,H], cell [1,B,H]).
    compute_dtype: MXU operand dtype (bf16 = production, f32 = exact test mode).
    quantize_out:  int8 storage for the output-projection weight (default: bf16 mode only).
    """
    if quantize_out is None:
        quantize_out = jnp.dtype(compute_dtype) == jnp.dtype(jnp.bfloat16)

    emb = params['embedding'][input_tokens]            # [B, E]  (gather stays in XLA)
    # TODO(synk): dropout on the embedded input is identity (inference mode).
    h = decoder_hidden[0]                              # [B, H]
    c = cell[0]

    B, E = emb.shape
    S, He2 = encoder_outputs.shape[0], encoder_outputs.shape[2]
    H = h.shape[1]
    V = params['wo_e'].shape[1]

    cdt_item = jnp.dtype(compute_dtype).itemsize

    emb_c = emb.astype(compute_dtype)
    h_f = h.astype(jnp.float32)
    c_f = c.astype(jnp.float32)
    mask_f = mask.astype(jnp.float32)

    # Batch-major flat encoder outputs; under jit the transpose + cast + reshape fuse
    # into a single XLA pass.
    # TODO(synk): feed the natural [S*B, 2He] order + in-kernel cast to drop this pass,
    # and tile the prologue over S if the encoder output outgrows VMEM.
    enc_flat = (jnp.transpose(encoder_outputs, (1, 0, 2))
                .reshape(B * S, He2).astype(compute_dtype))

    # ---- stack split weights so each projection is ONE matmul ----
    w_gates = jnp.concatenate(
        [params['wih_e'], params['wih_w'], params['whh']], axis=0).astype(compute_dtype)
    w_out = jnp.concatenate(
        [params['wo_h'], params['wo_w'], params['wo_e']], axis=0)          # [H+2He+E, V]
    K_lstm = w_gates.shape[0]
    K_out = w_out.shape[0]

    wa_h_q = params['wa_h'].astype(compute_dtype)
    wa_e_q = params['wa_e'].astype(compute_dtype)
    ba = params['ba'].astype(jnp.float32)
    b_gates = params['b_gates'].astype(jnp.float32)

    # ---- generation-aware VMEM budget and vocab tile ----
    vmem_cap = _vmem_capacity_bytes()
    budget = int(min(vmem_cap * 3 // 4, 100 * 2**20))       # ~48 MiB v7x, ~96-100 MiB v5e/v6e
    w_item = 1 if quantize_out else cdt_item
    tv_target = 8192 if vmem_cap >= 96 * 2**20 else 2048
    if v_tile is not None:
        tv_target = max(128, _round_up(v_tile, 128))

    V128 = _round_up(V, 128)
    TV = min(_round_up(tv_target, 128), V128)

    def proj_vmem(tv):
        # double-buffered tiled operands + (conservatively doubled) resident cat
        return 2 * (K_out * tv * w_item + 2 * tv * 4 + B * tv * 4 + B * K_out * cdt_item)

    while proj_vmem(TV) > budget and TV > 256:
        TV = max(128, _round_up(TV // 2, 128))
    nv = pl.cdiv(V128, TV)
    TV = _round_up(pl.cdiv(V128, nv), 128)                  # minimize pure-padding columns
    V_pad = nv * TV
    # TODO(synk): consider pipeline_mode=pl.Buffered(3) on the weight tile on v7x.

    bo_p = jnp.pad(params['bo'].astype(jnp.float32), ((0, 0), (0, V_pad - V)))
    if quantize_out:
        w_q, w_scale = _quantize_int8_per_column(w_out)
        w_store = jnp.pad(w_q, ((0, 0), (0, V_pad - V)))
        scale_p = jnp.pad(w_scale, ((0, 0), (0, V_pad - V)), constant_values=1.0)
    else:
        w_store = jnp.pad(w_out, ((0, 0), (0, V_pad - V))).astype(compute_dtype)
        scale_p = jnp.ones((1, V_pad), jnp.float32)

    # ---- kernel 1: attention + LSTM (one shot) ----
    prologue_cost = pl.CostEstimate(
        flops=int(2 * (B * S * He2 * H + B * H * H + B * B * S * He2
                       + B * K_lstm * 4 * H)),
        transcendentals=int(B * S * H + B * S + 5 * B * H),
        bytes_accessed=int(
            (enc_flat.size + emb_c.size + wa_h_q.size + wa_e_q.size + w_gates.size
             + B * K_out) * cdt_item
            + (h_f.size + c_f.size + mask_f.size + ba.size + b_gates.size
               + 2 * B * H) * 4))

    cat, h_new, c_new = pl.pallas_call(
        attention_lstm_kernel,
        out_shape=(
            jax.ShapeDtypeStruct((B, K_out), compute_dtype),
            jax.ShapeDtypeStruct((B, H), jnp.float32),
            jax.ShapeDtypeStruct((B, H), jnp.float32),
        ),
        grid_spec=pltpu.PrefetchScalarGridSpec(
            num_scalar_prefetch=0,
            grid=(1,),
            in_specs=[
                pl.BlockSpec((B, E), lambda i: (0, 0)),          # emb
                pl.BlockSpec((B, H), lambda i: (0, 0)),          # h
                pl.BlockSpec((B, H), lambda i: (0, 0)),          # c
                pl.BlockSpec((B * S, He2), lambda i: (0, 0)),    # enc (flattened)
                pl.BlockSpec((B, S), lambda i: (0, 0)),          # mask
                pl.BlockSpec((H, H), lambda i: (0, 0)),          # wa_h
                pl.BlockSpec((He2, H), lambda i: (0, 0)),        # wa_e
                pl.BlockSpec((1, H), lambda i: (0, 0)),          # ba
                pl.BlockSpec((K_lstm, 4 * H), lambda i: (0, 0)), # stacked LSTM weights
                pl.BlockSpec((1, 4 * H), lambda i: (0, 0)),      # LSTM gate bias
            ],
            out_specs=(
                pl.BlockSpec((B, K_out), lambda i: (0, 0)),
                pl.BlockSpec((B, H), lambda i: (0, 0)),
                pl.BlockSpec((B, H), lambda i: (0, 0)),
            ),
        ),
        compiler_params=pltpu.CompilerParams(
            dimension_semantics=("arbitrary",),
            vmem_limit_bytes=budget,
        ),
        cost_estimate=prologue_cost,
    )(emb_c, h_f, c_f, enc_flat, mask_f, wa_h_q, wa_e_q, ba, w_gates, b_gates)

    # ---- kernel 2: vocab-tiled projection, parallel grid (v7x megacore-friendly) ----
    proj_cost = pl.CostEstimate(
        flops=int(2 * B * K_out * V_pad),
        transcendentals=0,
        bytes_accessed=int(K_out * V_pad * w_item + 2 * V_pad * 4
                           + B * K_out * cdt_item + B * V_pad * 4))

    logits_p = pl.pallas_call(
        vocab_proj_kernel,
        out_shape=jax.ShapeDtypeStruct((B, V_pad), jnp.float32),
        grid_spec=pltpu.PrefetchScalarGridSpec(
            num_scalar_prefetch=0,
            grid=(nv,),
            in_specs=[
                pl.BlockSpec((B, K_out), lambda j: (0, 0)),      # cat (read-only resident)
                pl.BlockSpec((K_out, TV), lambda j: (0, j)),     # int8/bf16 weight tile
                pl.BlockSpec((1, TV), lambda j: (0, j)),         # per-column dequant scale
                pl.BlockSpec((1, TV), lambda j: (0, j)),         # bias tile
            ],
            out_specs=pl.BlockSpec((B, TV), lambda j: (0, j)),   # lane-dense logits tile
        ),
        compiler_params=pltpu.CompilerParams(
            dimension_semantics=("parallel",),                   # no cross-step state
            vmem_limit_bytes=budget,
        ),
        cost_estimate=proj_cost,
    )(cat, w_store, scale_p, bo_p)

    logits = logits_p[:, :V]
    return logits, h_new[None], c_new[None]


def reference_forward(params, input_tokens, decoder_hidden, cell, encoder_outputs, mask):
    """Pure-JAX float32 reference mirroring the PyTorch Decoder.forward."""
    emb = params['embedding'][input_tokens]
    h = decoder_hidden[0]
    c = cell[0]
    enc = jnp.transpose(encoder_outputs, (1, 0, 2))
    H = h.shape[1]

    h_part = h @ params['wa_h']
    enc_part = jnp.einsum('bse,eh->bsh', enc, params['wa_e'])
    energy = jnp.tanh(enc_part + h_part[:, None, :] + params['ba'])
    scores = jnp.sum(energy, axis=2)
    scores = jnp.where(mask.astype(jnp.float32) == 0.0, -1e9, scores)
    attn = jax.nn.softmax(scores, axis=1)
    weighted = jnp.einsum('bs,bse->be', attn, enc)

    gates = (emb @ params['wih_e'] + weighted @ params['wih_w']
             + h @ params['whh'] + params['b_gates'])
    i_g = jax.nn.sigmoid(gates[:, :H])
    f_g = jax.nn.sigmoid(gates[:, H:2 * H])
    g_g = jnp.tanh(gates[:, 2 * H:3 * H])
    o_g = jax.nn.sigmoid(gates[:, 3 * H:])
    c_new = f_g * c + i_g * g_g
    h_new = o_g * jnp.tanh(c_new)

    logits = (h_new @ params['wo_h'] + weighted @ params['wo_w']
              + emb @ params['wo_e'] + params['bo'])
    return logits, h_new[None], c_new[None]


def init_params(key, *, vocab, emb_dim, enc_hid, dec_hid):
    he2 = 2 * enc_hid
    ks = jax.random.split(key, 12)
    s = 0.1
    return {
        'embedding': jax.random.normal(ks[0], (vocab, emb_dim), jnp.float32) * s,
        # attention Linear(2*enc_hid + dec_hid -> dec_hid), split per input chunk
        'wa_h': jax.random.normal(ks[1], (dec_hid, dec_hid), jnp.float32) * s,
        'wa_e': jax.random.normal(ks[2], (he2, dec_hid), jnp.float32) * s,
        'ba': jax.random.normal(ks[3], (1, dec_hid), jnp.float32) * s,
        # LSTM(enc_hid*2 + emb -> dec_hid), W_ih split into emb / weighted parts
        'wih_e': jax.random.normal(ks[4], (emb_dim, 4 * dec_hid), jnp.float32) * s,
        'wih_w': jax.random.normal(ks[5], (he2, 4 * dec_hid), jnp.float32) * s,
        'whh': jax.random.normal(ks[6], (dec_hid, 4 * dec_hid), jnp.float32) * s,
        'b_gates': jax.random.normal(ks[7], (1, 4 * dec_hid), jnp.float32) * s,  # b_ih+b_hh
        # out Linear(dec_hid + 2*enc_hid + emb -> vocab), split per input chunk
        'wo_h': jax.random.normal(ks[8], (dec_hid, vocab), jnp.float32) * s,
        'wo_w': jax.random.normal(ks[9], (he2, vocab), jnp.float32) * s,
        'wo_e': jax.random.normal(ks[10], (emb_dim, vocab), jnp.float32) * s,
        'bo': jax.random.normal(ks[11], (1, vocab), jnp.float32) * s,
    }


if __name__ == "__main__":
    B, S, E, HENC, HDEC, V = 2, 8, 32, 32, 32, 64

    key = jax.random.PRNGKey(0)
    k_par, k_tok, k_h, k_c, k_enc = jax.random.split(key, 5)

    params = init_params(k_par, vocab=V, emb_dim=E, enc_hid=HENC, dec_hid=HDEC)

    input_tokens = jax.random.randint(k_tok, (B,), 0, V, dtype=jnp.int32)
    decoder_hidden = jax.random.normal(k_h, (1, B, HDEC), jnp.float32)
    cell = jax.random.normal(k_c, (1, B, HDEC), jnp.float32)
    encoder_outputs = jax.random.normal(k_enc, (S, B, 2 * HENC), jnp.float32)
    # second batch element has 3 padded positions
    lengths = jnp.array([[S], [S - 3]], dtype=jnp.int32)
    mask = (jnp.arange(S)[None, :] < lengths).astype(jnp.float32)   # [B, S]

    # ---- exact-semantics check: f32 compute, unquantized, vs pure-JAX reference ----
    logits32, h32, c32 = decoder_forward(
        params, input_tokens, decoder_hidden, cell, encoder_outputs, mask,
        compute_dtype=jnp.float32)
    jax.block_until_ready((logits32, h32, c32))
    ref_logits, ref_h, ref_c = reference_forward(
        params, input_tokens, decoder_hidden, cell, encoder_outputs, mask)

    assert logits32.shape == (B, V) and h32.shape == (1, B, HDEC) and c32.shape == (1, B, HDEC)
    assert jnp.allclose(logits32, ref_logits, atol=5e-4, rtol=5e-4)
    assert jnp.allclose(h32, ref_h, atol=2e-4, rtol=2e-4)
    assert jnp.allclose(c32, ref_c, atol=2e-4, rtol=2e-4)

    # ---- production path: bf16 activations, int8-quantized output weights ----
    logits_bf, h_bf, c_bf = decoder_forward(
        params, input_tokens, decoder_hidden, cell, encoder_outputs, mask,
        compute_dtype=jnp.bfloat16)
    jax.block_until_ready((logits_bf, h_bf, c_bf))

    # reference evaluated with the SAME int8-dequantized output weights and
    # bf16-roundtripped other weights (isolates bf16-activation error only)
    w_out_f32 = jnp.concatenate([params['wo_h'], params['wo_w'], params['wo_e']], axis=0)
    w_q, w_scale = _quantize_int8_per_column(w_out_f32)
    w_dq = w_q.astype(jnp.float32) * w_scale
    params_q = dict(params)
    for k in ('embedding', 'wa_h', 'wa_e', 'wih_e', 'wih_w', 'whh'):
        params_q[k] = params[k].astype(jnp.bfloat16).astype(jnp.float32)
    params_q['wo_h'] = w_dq[:HDEC]
    params_q['wo_w'] = w_dq[HDEC:HDEC + 2 * HENC]
    params_q['wo_e'] = w_dq[HDEC + 2 * HENC:]
    refq_logits, refq_h, refq_c = reference_forward(
        params_q, input_tokens, decoder_hidden, cell, encoder_outputs, mask)

    assert jnp.allclose(logits_bf, refq_logits, atol=6e-2, rtol=6e-2)
    assert jnp.allclose(h_bf, refq_h, atol=4e-2, rtol=4e-2)
    assert jnp.allclose(c_bf, refq_c, atol=4e-2, rtol=4e-2)

    print("KERNEL_OK")
</pallas_src>

<mosaic_0001>
module attributes {stable_mosaic.version = 11 : i64} {
  func.func @attention_lstm_kernel(%arg0: i32, %arg1: memref<2x32xf32, #tpu.memory_space<vmem>>, %arg2: memref<2x32xf32, #tpu.memory_space<vmem>>, %arg3: memref<2x32xf32, #tpu.memory_space<vmem>>, %arg4: memref<16x64xf32, #tpu.memory_space<vmem>>, %arg5: memref<2x8xf32, #tpu.memory_space<vmem>>, %arg6: memref<32x32xf32, #tpu.memory_space<vmem>>, %arg7: memref<64x32xf32, #tpu.memory_space<vmem>>, %arg8: memref<1x32xf32, #tpu.memory_space<vmem>>, %arg9: memref<128x128xf32, #tpu.memory_space<vmem>>, %arg10: memref<1x128xf32, #tpu.memory_space<vmem>>, %arg11: memref<2x128xf32, #tpu.memory_space<vmem>>, %arg12: memref<2x32xf32, #tpu.memory_space<vmem>>, %arg13: memref<2x32xf32, #tpu.memory_space<vmem>>) attributes {dimension_semantics = [#tpu.dimension_semantics<arbitrary>], iteration_bounds = array<i64: 1>, scalar_prefetch = 0 : i64, scratch_operands = 0 : i64, tpu.core_type = #tpu.core_type<tc>, window_params = [{pipeline_mode = #tpu.pipeline_mode<synchronous>, transform_indices = @transform_0, window_bounds = array<i64: 2, 32>}, {pipeline_mode = #tpu.pipeline_mode<synchronous>, transform_indices = @transform_1, window_bounds = array<i64: 2, 32>}, {pipeline_mode = #tpu.pipeline_mode<synchronous>, transform_indices = @transform_2, window_bounds = array<i64: 2, 32>}, {pipeline_mode = #tpu.pipeline_mode<synchronous>, transform_indices = @transform_3, window_bounds = array<i64: 16, 64>}, {pipeline_mode = #tpu.pipeline_mode<synchronous>, transform_indices = @transform_4, window_bounds = array<i64: 2, 8>}, {pipeline_mode = #tpu.pipeline_mode<synchronous>, transform_indices = @transform_5, window_bounds = array<i64: 32, 32>}, {pipeline_mode = #tpu.pipeline_mode<synchronous>, transform_indices = @transform_6, window_bounds = array<i64: 64, 32>}, {pipeline_mode = #tpu.pipeline_mode<synchronous>, transform_indices = @transform_7, window_bounds = array<i64: 1, 32>}, {pipeline_mode = #tpu.pipeline_mode<synchronous>, transform_indices = @transform_8, window_bounds = array<i64: 128, 128>}, {pipeline_mode = #tpu.pipeline_mode<synchronous>, transform_indices = @transform_9, window_bounds = array<i64: 1, 128>}, {pipeline_mode = #tpu.pipeline_mode<synchronous>, transform_indices = @transform_10, window_bounds = array<i64: 2, 128>}, {pipeline_mode = #tpu.pipeline_mode<synchronous>, transform_indices = @transform_11, window_bounds = array<i64: 2, 32>}, {pipeline_mode = #tpu.pipeline_mode<synchronous>, transform_indices = @transform_12, window_bounds = array<i64: 2, 32>}]} {
    %c0 = arith.constant 0 : index
    %c0_0 = arith.constant 0 : index
    %0 = vector.load %arg1[%c0, %c0_0] : memref<2x32xf32, #tpu.memory_space<vmem>>, vector<2x32xf32>
    %c0_1 = arith.constant 0 : index
    %c0_2 = arith.constant 0 : index
    %1 = vector.load %arg2[%c0_1, %c0_2] : memref<2x32xf32, #tpu.memory_space<vmem>>, vector<2x32xf32>
    %c0_3 = arith.constant 0 : index
    %c0_4 = arith.constant 0 : index
    %2 = vector.load %arg3[%c0_3, %c0_4] : memref<2x32xf32, #tpu.memory_space<vmem>>, vector<2x32xf32>
    %c0_5 = arith.constant 0 : index
    %c0_6 = arith.constant 0 : index
    %3 = vector.load %arg4[%c0_5, %c0_6] : memref<16x64xf32, #tpu.memory_space<vmem>>, vector<16x64xf32>
    %c0_7 = arith.constant 0 : index
    %c0_8 = arith.constant 0 : index
    %4 = vector.load %arg7[%c0_7, %c0_8] : memref<64x32xf32, #tpu.memory_space<vmem>>, vector<64x32xf32>
    %cst = arith.constant dense<0.000000e+00> : vector<16x32xf32>
    %5 = tpu.matmul %3, %4, %cst {dimension_numbers = #tpu.dot_dimension_numbers<[1], [0], [0], [1], [0, 0, 1, 1], [], []>} : vector<16x64xf32>, vector<64x32xf32>, vector<16x32xf32> -> vector<16x32xf32>
    %c0_9 = arith.constant 0 : index
    %c0_10 = arith.constant 0 : index
    %6 = vector.load %arg6[%c0_9, %c0_10] : memref<32x32xf32, #tpu.memory_space<vmem>>, vector<32x32xf32>
    %cst_11 = arith.constant dense<0.000000e+00> : vector<2x32xf32>
    %7 = tpu.matmul %1, %6, %cst_11 {dimension_numbers = #tpu.dot_dimension_numbers<[1], [0], [0], [1], [0, 0, 1, 1], [], []>} : vector<2x32xf32>, vector<32x32xf32>, vector<2x32xf32> -> vector<2x32xf32>
    %8 = vector.shape_cast %5 : vector<16x32xf32> to vector<2x8x32xf32>
    %9 = vector.shape_cast %7 : vector<2x32xf32> to vector<2x1x32xf32>
    %10 = vector.broadcast %9 : vector<2x1x32xf32> to vector<2x8x32xf32>
    %11 = arith.addf %8, %10 : vector<2x8x32xf32>
    %c0_12 = arith.constant 0 : index
    %c0_13 = arith.constant 0 : index
    %12 = vector.load %arg8[%c0_12, %c0_13] : memref<1x32xf32, #tpu.memory_space<vmem>>, vector<1x32xf32>
    %13 = vector.shape_cast %12 : vector<1x32xf32> to vector<1x1x32xf32>
    %14 = vector.broadcast %13 : vector<1x1x32xf32> to vector<2x8x32xf32>
    %15 = arith.addf %11, %14 : vector<2x8x32xf32>
    %16 = math.tanh %15 : vector<2x8x32xf32>
    %cst_14 = arith.constant dense<0.000000e+00> : vector<2x8xf32>
    %17 = vector.multi_reduction <add>, %16, %cst_14 [2] : vector<2x8x32xf32> to vector<2x8xf32>
    %c0_15 = arith.constant 0 : index
    %c0_16 = arith.constant 0 : index
    %18 = vector.load %arg5[%c0_15, %c0_16] : memref<2x8xf32, #tpu.memory_space<vmem>>, vector<2x8xf32>
    %cst_17 = arith.constant 0.000000e+00 : f32
    %19 = vector.broadcast %cst_17 : f32 to vector<2x8xf32>
    %20 = arith.cmpf oeq, %18, %19 : vector<2x8xf32>
    %cst_18 = arith.constant -1.000000e+09 : f32
    %21 = vector.broadcast %cst_18 : f32 to vector<2x8xf32>
    %22 = arith.select %20, %21, %17 : vector<2x8xi1>, vector<2x8xf32>
    %cst_19 = arith.constant dense<0xFF800000> : vector<2xf32>
    %23 = vector.multi_reduction <maximumf>, %22, %cst_19 [1] : vector<2x8xf32> to vector<2xf32>
    %24 = vector.shape_cast %23 : vector<2xf32> to vector<2x1xf32>
    %25 = vector.broadcast %24 : vector<2x1xf32> to vector<2x8xf32>
    %26 = arith.subf %22, %25 : vector<2x8xf32>
    %27 = math.exp %26 : vector<2x8xf32>
    %cst_20 = arith.constant dense<0.000000e+00> : vector<2xf32>
    %28 = vector.multi_reduction <add>, %27, %cst_20 [1] : vector<2x8xf32> to vector<2xf32>
    %29 = vector.shape_cast %28 : vector<2xf32> to vector<2x1xf32>
    %30 = tpu.reciprocal %29 : vector<2x1xf32> -> vector<2x1xf32>
    %31 = vector.broadcast %30 : vector<2x1xf32> to vector<2x8xf32>
    %32 = arith.mulf %27, %31 : vector<2x8xf32>
    %33 = tpu.iota {dimensions = array<i32: 1>} : vector<2x16xi32>
    %34 = tpu.iota {dimensions = array<i32: 0>} : vector<2x16xi32>
    %c8_i32 = arith.constant 8 : i32
    %35 = vector.broadcast %c8_i32 : i32 to vector<2x16xi32>
    %36 = arith.muli %34, %35 : vector<2x16xi32>
    %37 = arith.cmpi sge, %33, %36 : vector<2x16xi32>
    %c1_i32 = arith.constant 1 : i32
    %38 = vector.broadcast %c1_i32 : i32 to vector<2x16xi32>
    %39 = arith.addi %34, %38 : vector<2x16xi32>
    %c8_i32_21 = arith.constant 8 : i32
    %40 = vector.broadcast %c8_i32_21 : i32 to vector<2x16xi32>
    %41 = arith.muli %39, %40 : vector<2x16xi32>
    %42 = arith.cmpi slt, %33, %41 : vector<2x16xi32>
    %43 = arith.andi %37, %42 : vector<2x16xi1>
    %44 = tpu.concatenate %32, %32 in 1 : vector<2x8xf32>, vector<2x8xf32> -> vector<2x16xf32>
    %cst_22 = arith.constant 0.000000e+00 : f32
    %45 = vector.broadcast %cst_22 : f32 to vector<2x16xf32>
    %46 = arith.select %43, %44, %45 : vector<2x16xi1>, vector<2x16xf32>
    %cst_23 = arith.constant dense<0.000000e+00> : vector<2x64xf32>
    %47 = tpu.matmul %46, %3, %cst_23 {dimension_numbers = #tpu.dot_dimension_numbers<[1], [0], [0], [1], [0, 0, 1, 1], [], []>} : vector<2x16xf32>, vector<16x64xf32>, vector<2x64xf32> -> vector<2x64xf32>
    %48 = tpu.concatenate %0, %47, %1 in 1 : vector<2x32xf32>, vector<2x64xf32>, vector<2x32xf32> -> vector<2x128xf32>
    %c0_24 = arith.constant 0 : index
    %c0_25 = arith.constant 0 : index
    %49 = vector.load %arg9[%c0_24, %c0_25] : memref<128x128xf32, #tpu.memory_space<vmem>>, vector<128x128xf32>
    %cst_26 = arith.constant dense<0.000000e+00> : vector<2x128xf32>
    %50 = tpu.matmul %48, %49, %cst_26 {dimension_numbers = #tpu.dot_dimension_numbers<[1], [0], [0], [1], [0, 0, 1, 1], [], []>} : vector<2x128xf32>, vector<128x128xf32>, vector<2x128xf32> -> vector<2x128xf32>
    %c0_27 = arith.constant 0 : index
    %c0_28 = arith.constant 0 : index
    %51 = vector.load %arg10[%c0_27, %c0_28] : memref<1x128xf32, #tpu.memory_space<vmem>>, vector<1x128xf32>
    %52 = vector.broadcast %51 : vector<1x128xf32> to vector<2x128xf32>
    %53 = arith.addf %50, %52 : vector<2x128xf32>
    %54 = vector.extract_strided_slice %53 {offsets = [0, 0], sizes = [2, 32], strides = [1, 1]} : vector<2x128xf32> to vector<2x32xf32>
    %55 = arith.negf %54 : vector<2x32xf32>
    %56 = math.exp %55 : vector<2x32xf32>
    %cst_29 = arith.constant 1.000000e+00 : f32
    %57 = vector.broadcast %cst_29 : f32 to vector<2x32xf32>
    %58 = arith.addf %57, %56 : vector<2x32xf32>
    %59 = arith.divf %57, %58 : vector<2x32xf32>
    %60 = vector.extract_strided_slice %53 {offsets = [0, 32], sizes = [2, 32], strides = [1, 1]} : vector<2x128xf32> to vector<2x32xf32>
    %61 = arith.negf %60 : vector<2x32xf32>
    %62 = math.exp %61 : vector<2x32xf32>
    %cst_30 = arith.constant 1.000000e+00 : f32
    %63 = vector.broadcast %cst_30 : f32 to vector<2x32xf32>
    %64 = arith.addf %63, %62 : vector<2x32xf32>
    %65 = arith.divf %63, %64 : vector<2x32xf32>
    %66 = vector.extract_strided_slice %53 {offsets = [0, 64], sizes = [2, 32], strides = [1, 1]} : vector<2x128xf32> to vector<2x32xf32>
    %67 = math.tanh %66 : vector<2x32xf32>
    %68 = vector.extract_strided_slice %53 {offsets = [0, 96], sizes = [2, 32], strides = [1, 1]} : vector<2x128xf32> to vector<2x32xf32>
    %69 = arith.negf %68 : vector<2x32xf32>
    %70 = math.exp %69 : vector<2x32xf32>
    %cst_31 = arith.constant 1.000000e+00 : f32
    %71 = vector.broadcast %cst_31 : f32 to vector<2x32xf32>
    %72 = arith.addf %71, %70 : vector<2x32xf32>
    %73 = arith.divf %71, %72 : vector<2x32xf32>
    %74 = arith.mulf %65, %2 : vector<2x32xf32>
    %75 = arith.mulf %59, %67 : vector<2x32xf32>
    %76 = arith.addf %74, %75 : vector<2x32xf32>
    %77 = math.tanh %76 : vector<2x32xf32>
    %78 = arith.mulf %73, %77 : vector<2x32xf32>
    %c0_32 = arith.constant 0 : index
    %c0_33 = arith.constant 0 : index
    %79 = vector.load %arg12[%c0_32, %c0_33] : memref<2x32xf32, #tpu.memory_space<vmem>>, vector<2x32xf32>
    tpu.vector_store %arg12[%c0_32, %c0_33], %78 {strides = array<i32>} : memref<2x32xf32, #tpu.memory_space<vmem>>, vector<2x32xf32>,
    %c0_34 = arith.constant 0 : index
    %c0_35 = arith.constant 0 : index
    %80 = vector.load %arg13[%c0_34, %c0_35] : memref<2x32xf32, #tpu.memory_space<vmem>>, vector<2x32xf32>
    tpu.vector_store %arg13[%c0_34, %c0_35], %76 {strides = array<i32>} : memref<2x32xf32, #tpu.memory_space<vmem>>, vector<2x32xf32>,
    %81 = tpu.concatenate %78, %47, %0 in 1 : vector<2x32xf32>, vector<2x64xf32>, vector<2x32xf32> -> vector<2x128xf32>
    %c0_36 = arith.constant 0 : index
    %c0_37 = arith.constant 0 : index
    %82 = vector.load %arg11[%c0_36, %c0_37] : memref<2x128xf32, #tpu.memory_space<vmem>>, vector<2x128xf32>
    tpu.vector_store %arg11[%c0_36, %c0_37], %81 {strides = array<i32>} : memref<2x128xf32, #tpu.memory_space<vmem>>, vector<2x128xf32>,
    return
  }
  func.func @transform_0(%arg0: i32) -> (i32, i32) {
    %c0_i32 = arith.constant 0 : i32
    %c0_i32_0 = arith.constant 0 : i32
    %c0_i32_1 = arith.constant 0 : i32
    return %c0_i32, %c0_i32_0 : i32, i32
  }
  func.func @transform_1(%arg0: i32) -> (i32, i32) {
    %c0_i32 = arith.constant 0 : i32
    %c0_i32_0 = arith.constant 0 : i32
    %c0_i32_1 = arith.constant 0 : i32
    return %c0_i32, %c0_i32_0 : i32, i32
  }
  func.func @transform_2(%arg0: i32) -> (i32, i32) {
    %c0_i32 = arith.constant 0 : i32
    %c0_i32_0 = arith.constant 0 : i32
    %c0_i32_1 = arith.constant 0 : i32
    return %c0_i32, %c0_i32_0 : i32, i32
  }
  func.func @transform_3(%arg0: i32) -> (i32, i32) {
    %c0_i32 = arith.constant 0 : i32
    %c0_i32_0 = arith.constant 0 : i32
    %c0_i32_1 = arith.constant 0 : i32
    return %c0_i32, %c0_i32_0 : i32, i32
  }
  func.func @transform_4(%arg0: i32) -> (i32, i32) {
    %c0_i32 = arith.constant 0 : i32
    %c0_i32_0 = arith.constant 0 : i32
    %c0_i32_1 = arith.constant 0 : i32
    return %c0_i32, %c0_i32_0 : i32, i32
  }
  func.func @transform_5(%arg0: i32) -> (i32, i32) {
    %c0_i32 = arith.constant 0 : i32
    %c0_i32_0 = arith.constant 0 : i32
    %c0_i32_1 = arith.constant 0 : i32
    return %c0_i32, %c0_i32_0 : i32, i32
  }
  func.func @transform_6(%arg0: i32) -> (i32, i32) {
    %c0_i32 = arith.constant 0 : i32
    %c0_i32_0 = arith.constant 0 : i32
    %c0_i32_1 = arith.constant 0 : i32
    return %c0_i32, %c0_i32_0 : i32, i32
  }
  func.func @transform_7(%arg0: i32) -> (i32, i32) {
    %c0_i32 = arith.constant 0 : i32
    %c0_i32_0 = arith.constant 0 : i32
    %c0_i32_1 = arith.constant 0 : i32
    return %c0_i32, %c0_i32_0 : i32, i32
  }
  func.func @transform_8(%arg0: i32) -> (i32, i32) {
    %c0_i32 = arith.constant 0 : i32
    %c0_i32_0 = arith.constant 0 : i32
    %c0_i32_1 = arith.constant 0 : i32
    return %c0_i32, %c0_i32_0 : i32, i32
  }
  func.func @transform_9(%arg0: i32) -> (i32, i32) {
    %c0_i32 = arith.constant 0 : i32
    %c0_i32_0 = arith.constant 0 : i32
    %c0_i32_1 = arith.constant 0 : i32
    return %c0_i32, %c0_i32_0 : i32, i32
  }
  func.func @transform_10(%arg0: i32) -> (i32, i32) {
    %c0_i32 = arith.constant 0 : i32
    %c0_i32_0 = arith.constant 0 : i32
    %c0_i32_1 = arith.constant 0 : i32
    return %c0_i32, %c0_i32_0 : i32, i32
  }
  func.func @transform_11(%arg0: i32) -> (i32, i32) {
    %c0_i32 = arith.constant 0 : i32
    %c0_i32_0 = arith.constant 0 : i32
    %c0_i32_1 = arith.constant 0 : i32
    return %c0_i32, %c0_i32_0 : i32, i32
  }
  func.func @transform_12(%arg0: i32) -> (i32, i32) {
    %c0_i32 = arith.constant 0 : i32
    %c0_i32_0 = arith.constant 0 : i32
    %c0_i32_1 = arith.constant 0 : i32
    return %c0_i32, %c0_i32_0 : i32, i32
  }
}

module attributes {stable_mosaic.version = 11 : i64} {
  func.func @vocab_proj_kernel(%arg0: i32, %arg1: memref<2x128xf32, #tpu.memory_space<vmem>>, %arg2: memref<128x128xf32, #tpu.memory_space<vmem>>, %arg3: memref<1x128xf32, #tpu.memory_space<vmem>>, %arg4: memref<1x128xf32, #tpu.memory_space<vmem>>, %arg5: memref<2x128xf32, #tpu.memory_space<vmem>>) attributes {dimension_semantics = [#tpu.dimension_semantics<parallel>], iteration_bounds = array<i64: 1>, scalar_prefetch = 0 : i64, scratch_operands = 0 : i64, tpu.core_type = #tpu.core_type<tc>, window_params = [{pipeline_mode = #tpu.pipeline_mode<synchronous>, transform_indices = @transform_0, window_bounds = array<i64: 2, 128>}, {transform_indices = @transform_1, window_bounds = array<i64: 128, 128>}, {transform_indices = @transform_2, window_bounds = array<i64: 1, 128>}, {transform_indices = @transform_3, window_bounds = array<i64: 1, 128>}, {transform_indices = @transform_4, window_bounds = array<i64: 2, 128>}]} {
    %c0 = arith.constant 0 : index
    %c0_0 = arith.constant 0 : index
    %0 = vector.load %arg2[%c0, %c0_0] : memref<128x128xf32, #tpu.memory_space<vmem>>, vector<128x128xf32>
    %c0_1 = arith.constant 0 : index
    %c0_2 = arith.constant 0 : index
    %1 = vector.load %arg1[%c0_1, %c0_2] : memref<2x128xf32, #tpu.memory_space<vmem>>, vector<2x128xf32>
    %cst = arith.constant dense<0.000000e+00> : vector<2x128xf32>
    %2 = tpu.matmul %1, %0, %cst {dimension_numbers = #tpu.dot_dimension_numbers<[1], [0], [0], [1], [0, 0, 1, 1], [], []>} : vector<2x128xf32>, vector<128x128xf32>, vector<2x128xf32> -> vector<2x128xf32>
    %c0_3 = arith.constant 0 : index
    %c0_4 = arith.constant 0 : index
    %3 = vector.load %arg3[%c0_3, %c0_4] : memref<1x128xf32, #tpu.memory_space<vmem>>, vector<1x128xf32>
    %4 = vector.broadcast %3 : vector<1x128xf32> to vector<2x128xf32>
    %5 = arith.mulf %2, %4 : vector<2x128xf32>
    %c0_5 = arith.constant 0 : index
    %c0_6 = arith.constant 0 : index
    %6 = vector.load %arg4[%c0_5, %c0_6] : memref<1x128xf32, #tpu.memory_space<vmem>>, vector<1x128xf32>
    %7 = vector.broadcast %6 : vector<1x128xf32> to vector<2x128xf32>
    %8 = arith.addf %5, %7 : vector<2x128xf32>
    %c0_7 = arith.constant 0 : index
    %c0_8 = arith.constant 0 : index
    %9 = vector.load %arg5[%c0_7, %c0_8] : memref<2x128xf32, #tpu.memory_space<vmem>>, vector<2x128xf32>
    tpu.vector_store %arg5[%c0_7, %c0_8], %8 {strides = array<i32>} : memref<2x128xf32, #tpu.memory_space<vmem>>, vector<2x128xf32>,
    return
  }
  func.func @transform_0(%arg0: i32) -> (i32, i32) {
    %c0_i32 = arith.constant 0 : i32
    %c0_i32_0 = arith.constant 0 : i32
    %c0_i32_1 = arith.constant 0 : i32
    return %c0_i32, %c0_i32_0 : i32, i32
  }
  func.func @transform_1(%arg0: i32) -> (i32, i32) {
    %c0_i32 = arith.constant 0 : i32
    %c0_i32_0 = arith.constant 0 : i32
    return %c0_i32, %arg0 : i32, i32
  }
  func.func @transform_2(%arg0: i32) -> (i32, i32) {
    %c0_i32 = arith.constant 0 : i32
    %c0_i32_0 = arith.constant 0 : i32
    return %c0_i32, %arg0 : i32, i32
  }
  func.func @transform_3(%arg0: i32) -> (i32, i32) {
    %c0_i32 = arith.constant 0 : i32
    %c0_i32_0 = arith.constant 0 : i32
    return %c0_i32, %arg0 : i32, i32
  }
  func.func @transform_4(%arg0: i32) -> (i32, i32) {
    %c0_i32 = arith.constant 0 : i32
    %c0_i32_0 = arith.constant 0 : i32
    return %c0_i32, %arg0 : i32, i32
  }
}

</mosaic_0001>

<bundles_post_ra>
// kernel: decoder_forward.3
= control target key start
LH: loop header
LB: loop body
LE: loop exit
PB: predicated region body
PF: predicated region fallthrough
CT: control target
= control target key end

     0   :  { %s197_s0 = inlined_call_operand.vmem [shape: f32[2,128], index: 0, kind: input, shape index: {}]   ;;  %s198_s1 = inlined_call_operand.vmem [shape: f32[128,128], index: 1, kind: input, shape index: {}]   ;;  %s199_s2 = inlined_call_operand.vmem [shape: f32[1,128], index: 2, kind: input, shape index: {}]   ;;  %s200_s3 = inlined_call_operand.vmem [shape: f32[1,128], index: 3, kind: input, shape index: {}]   ;;  %s201_s4 = inlined_call_operand.hbm [shape: f32[2,128], index: 4, kind: output, shape index: {}]  }
   0x1   :  { %v33_v0 = vld [vmem:[%s198_s1 + $0x78] sm:$0xff]  ;;  %v32_v1 = vld [vmem:[%s198_s1 + $0x70] sm:$0xff]  ;;  %v31_v2 = vld [vmem:[%s198_s1 + $0x68] sm:$0xff] }
   0x2   :  { %35 = vmatpush.msra.mxu0 %v33_v0  ;;  %v30_v3 = vld [vmem:[%s198_s1 + $0x60] sm:$0xff]  ;;  %v29_v4 = vld [vmem:[%s198_s1 + $0x58] sm:$0xff] }
   0x4   :  { %36 = vmatpush.msra.mxu0 %v32_v1 }
   0x6   :  { %37 = vmatpush.msra.mxu0 %v31_v2 }
   0x7   :  { %9 = vsyncpa [#allocation3], 0  ;;  %v28_v5 = vld [vmem:[%s198_s1 + $0x50] sm:$0xff]  ;;  %v27_v6 = vld [vmem:[%s198_s1 + $0x48] sm:$0xff]  ;;  %s111_s27 = smov [#allocation2]   ;;  %s73_s30 = sshll.u32 %s201_s4, 4  ;;  %s74_s30 = int_to_ptr.hbm [resolvable:$true] %s73_s30 }
   0x8   :  { %38 = vmatpush.msra.mxu0 %v30_v3  ;;  %v26_v7 = vld [vmem:[%s198_s1 + $0x40] sm:$0xff]  ;;  %v25_v8 = vld [vmem:[%s198_s1 + $0x38] sm:$0xff]  ;;  %v24_v9 = vld [vmem:[%s198_s1 + $0x30] sm:$0xff]  ;;  %s71_s28 = sshll.u32 %s111_s27, 4  ;;  %s72_s28 = int_to_ptr.vmem [resolvable:$true] %s71_s28 }
   0x9   :  { %v23_v10 = vld [vmem:[%s198_s1 + $0x28] sm:$0xff]  ;;  %v22_v11 = vld [vmem:[%s198_s1 + $0x20] sm:$0xff]  ;;  %v21_v12 = vld [vmem:[%s198_s1 + $0x18] sm:$0xff] }
   0xa   :  { %39 = vmatpush.msra.mxu0 %v29_v4  ;;  %v20_v13 = vld [vmem:[%s198_s1 + $0x10] sm:$0xff]  ;;  %v19_v14 = vld [vmem:[%s198_s1 + $0x8] sm:$0xff]  ;;  %v18_v15 = vld [vmem:[%s198_s1] sm:$0xff] }
   0xb   :  { %v34_v16 = vld [vmem:[%s197_s0] sm:$0x3] }
   0xc   :  { %40 = vmatpush.msra.mxu0 %v28_v5  ;;  %v83_v17 = vld [vmem:[%s199_s2] ss:$0 sm:$0xff] }
   0xd   :  { %v84_v18 = vld [vmem:[%s200_s3] ss:$0 sm:$0xff] }
   0xe   :  { %41 = vmatpush.msra.mxu0 %v27_v6 }
  0x10   :  { %42 = vmatpush.msra.mxu0 %v26_v7 }
  0x12   :  { %43 = vmatpush.msra.mxu0 %v25_v8 }
  0x14   :  { %44 = vmatpush.msra.mxu0 %v24_v9 }
  0x16   :  { %45 = vmatpush.msra.mxu0 %v23_v10 }
  0x18   :  { %46 = vmatpush.msra.mxu0 %v22_v11 }
  0x1a   :  { %47 = vmatpush.msra.mxu0 %v21_v12 }
  0x1c   :  { %48 = vmatpush.msra.mxu0 %v20_v13 }
  0x1e   :  { %49 = vmatpush.msra.mxu0 %v19_v14 }
  0x20   :  { %50 = vmatpush.msra.mxu0 %v18_v15 }
  0x21   :  { %51 = vmatmul.f32.vlgmr.msra.gmra.mxu0 %v34_v16 }
  0x9e   :  { %v52_v19 = vpop.f32.mrf.mxu0 }
  0x9f   :  { %v59_v20 = vmul.f32 %v83_v17, %v52_v19 }
  0xa1   :  { %v64_v21 = vadd.f32 %v84_v18, %v59_v20 }
  0xa3   :  { %65 = vst [vmem:[#allocation2] sm:$0x3] %v64_v21 }
  0xa4   :  { %76 = dma.vmem_to_hbm [thread:$0]  %s72_s28, 32, %s74_s30, [#allocation3]  }
  0xa5   :  { %109 = dma.done.wait [#allocation3], 32  }
  0xa6   :  { %110 = vsyncadd [#allocation3], 4294967264 }
  0xa7   :  { %81 = vsyncpa [#allocation3], 1 }

// kernel: decoder_forward.2
= control target key start
LH: loop header
LB: loop body
LE: loop exit
PB: predicated region body
PF: predicated region fallthrough
CT: control target
= control target key end

     0   :  { %18 = vsyncpa [#allocation3], 0  ;;  %s643_s0 = inlined_call_operand.vmem [shape: f32[2,32], index: 0, kind: input, shape index: {}]   ;;  %s644_s1 = inlined_call_operand.vmem [shape: f32[2,32], index: 1, kind: input, shape index: {}]   ;;  %s645_s2 = inlined_call_operand.vmem [shape: f32[2,32], index: 2, kind: input, shape index: {}]   ;;  %s646_s3 = inlined_call_operand.vmem [shape: f32[16,64], index: 3, kind: input, shape index: {}]   ;;  %s647_s4 = inlined_call_operand.vmem [shape: f32[2,8], index: 4, kind: input, shape index: {}]   ;;  %s648_s5 = inlined_call_operand.vmem [shape: f32[32,32], index: 5, kind: input, shape index: {}]   ;;  %s649_s6 = inlined_call_operand.vmem [shape: f32[64,32], index: 6, kind: input, shape index: {}]   ;;  %s650_s7 = inlined_call_operand.vmem [shape: f32[1,32], index: 7, kind: input, shape index: {}]   ;;  %s651_s8 = inlined_call_operand.vmem [shape: f32[128,128], index: 8, kind: input, shape index: {}]   ;;  %s652_s9 = inlined_call_operand.vmem [shape: f32[1,128], index: 9, kind: input, shape index: {}]   ;;  %s653_s10 = inlined_call_operand.vmem [shape: f32[2,128], index: 10, kind: output, shape index: {0}]   ;;  %s654_s11 = inlined_call_operand.hbm [shape: f32[2,32], index: 11, kind: output, shape index: {1}]   ;;  %s655_s12 = inlined_call_operand.hbm [shape: f32[2,32], index: 12, kind: output, shape index: {2}]  }
   0x1   :  { %v52_v0 = vld [vmem:[%s649_s6 + $0x38] sm:$0xff]  ;;  %v51_v1 = vld [vmem:[%s649_s6 + $0x30] sm:$0xff]  ;;  %v50_v3 = vld [vmem:[%s649_s6 + $0x28] sm:$0xff] }
   0x2   :  { %68 = vmatpush.msra.mxu0 %v52_v0  ;;  %v86_v2 = vld [vmem:[%s648_s5 + $0x18] sm:$0xff]  ;;  %v85_v4 = vld [vmem:[%s648_s5 + $0x10] sm:$0xff]  ;;  %v84_v5 = vld [vmem:[%s648_s5 + $0x8] sm:$0xff] }
   0x3   :  { %103 = vmatpush.msra.mxu1 %v86_v2  ;;  %v49_v6 = vld [vmem:[%s649_s6 + $0x20] sm:$0xff]  ;;  %v44_v8 = vld [vmem:[%s646_s3 + $0x8] sm:$0xff] }
   0x4   :  { %69 = vmatpush.msra.mxu0 %v51_v1  ;;  %v83_v7 = vld [vmem:[%s648_s5] sm:$0xff]  ;;  %203 = vmatpush.msra.mxu2 %v44_v8 }
   0x5   :  { %104 = vmatpush.msra.mxu1 %v85_v4 }
   0x6   :  { %70 = vmatpush.msra.mxu0 %v50_v3 }
   0x7   :  { %19 = vsyncpa [#allocation5], 0  ;;  %v48_v9 = vld [vmem:[%s649_s6 + $0x18] sm:$0xff]  ;;  %105 = vmatpush.msra.mxu1 %v84_v5  ;;  %v41_v10 = vld [vmem:[%s644_s1] sm:$0x3]  ;;  %vm87_vm0 = vcmask 261120   ;;  %v137_v31 = vlaneseq }
   0x8   :  { %v43_v11 = vld [vmem:[%s646_s3] sm:$0xff]  ;;  %71 = vmatpush.msra.mxu0 %v49_v6  ;;  %v47_v12 = vld [vmem:[%s649_s6 + $0x10] sm:$0xff]  ;;  %v46_v13 = vld [vmem:[%s649_s6 + $0x8] sm:$0xff]  ;;  %vm53_vm1 = vcmask 523264   ;;  %vm141_vm2 = vcmask 1041409   ;;  %vm145_vm4 = vcmask 58368  }
   0x9   :  { %204 = vmatpush.msra.mxu2 %v43_v11  ;;  %106 = vmatpush.msra.mxu1 %v83_v7  ;;  %v45_v14 = vld [vmem:[%s649_s6] sm:$0xff]  ;;  %v138_v32 = vand.u32 127, %v137_v31  ;;  %s435_s14 = smov 96   ;;  %v171_v57 = vshrl.u32 %v137_v31, 7  ;;  %vm182_vm11 = vcmask 64512   ;;  %vm185_vm13 = vcmask 130048  }
   0xa   :  { %72 = vmatpush.msra.mxu0 %v48_v9  ;;  %356 = vmatmul.msk.f32.vlgmr.msra.gmra.mxu1 %vm87_vm0, %v41_v10  ;;  %v365_v17 = vld [vmem:[%s650_s7] ss:$0 sm:$0xff]  ;;  %v234_v0 = vld [vmem:[%s651_s8 + $0x78] sm:$0xff]  ;;  %v233_v1 = vld [vmem:[%s651_s8 + $0x70] sm:$0xff]  ;;  %s437_s22 = smov 32   ;;  %vm217_vm14 = vcmask 785408  }
   0xb   :  { %v133_v33 = vld [vmem:[%s647_s4] sm:$0x3]  ;;  %s436_s4 = smov 8   ;;  %v174_v58 = vadd.s32 1, %v171_v57  ;;  %v172_v59 = vmul.u32 8, %v171_v57  ;;  %239 = vmatpush.msra.mxu3 %v234_v0  ;;  %v232_v2 = vld [vmem:[%s651_s8 + $0x68] sm:$0xff] }
   0xc   :  { %73 = vmatpush.msra.mxu0 %v47_v12  ;;  %vm134_vm3 = vcmp.eq.f32.partialorder %v133_v33, 0.0  ;;  %v231_v3 = vld [vmem:[%s651_s8 + $0x60] sm:$0xff]  ;;  %v230_v4 = vld [vmem:[%s651_s8 + $0x58] sm:$0xff]  ;;  %v229_v5 = vld [vmem:[%s651_s8 + $0x50] sm:$0xff]  ;;  %s338_s30 = sshll.u32 %s655_s12, 4  ;;  %s440_s3 = smov [#allocation2]   ;;  %s339_s30 = int_to_ptr.hbm [resolvable:$true] %s338_s30 }
   0xd   :  { %v175_v60 = vmul.u32 8, %v174_v58  ;;  %vm173_vm9 = vcmp.ge.s32.totalorder %v138_v32, %v172_v59  ;;  %240 = vmatpush.msra.mxu3 %v233_v1  ;;  %v228_v6 = vld [vmem:[%s651_s8 + $0x48] sm:$0xff]  ;;  %v227_v7 = vld [vmem:[%s651_s8 + $0x40] sm:$0xff]  ;;  %v225_v9 = vld [vmem:[%s651_s8 + $0x30] sm:$0xff]  ;;  %s325_s13 = sshll.u32 %s440_s3, 4  ;;  %s327_s7 = sshll.u32 %s654_s11, 4  ;;  %s326_s13 = int_to_ptr.vmem [resolvable:$true] %s325_s13  ;;  %s328_s7 = int_to_ptr.hbm [resolvable:$true] %s327_s7 }
   0xe   :  { %74 = vmatpush.msra.mxu0 %v46_v13  ;;  %v222_v12 = vld [vmem:[%s651_s8 + $0x18] sm:$0xff]  ;;  %v221_v13 = vld [vmem:[%s651_s8 + $0x10] sm:$0xff] }
   0xf   :  { %vm176_vm10 = vcmp.lt.s32.totalorder %v138_v32, %v175_v60  ;;  %241 = vmatpush.msra.mxu3 %v232_v2 }
  0x10   :  { %75 = vmatpush.msra.mxu0 %v45_v14  ;;  %vm177_vm12 = vmand %vm173_vm9, %vm176_vm10  ;;  %v220_v14 = vld [vmem:[%s651_s8 + $0x8] sm:$0xff] }
  0x11   :  { %354 = vmatmul.msk.f32.vlgmr.msra.gmra.mxu0 %vm53_vm1, %v43_v11  ;;  %242 = vmatpush.msra.mxu3 %v231_v3  ;;  %v223_v11 = vld [vmem:[%s651_s8 + $0x20] sm:$0xff] }
  0x13   :  { %243 = vmatpush.msra.mxu3 %v230_v4 }
  0x15   :  { %244 = vmatpush.msra.mxu3 %v229_v5 }
  0x17   :  { %245 = vmatpush.msra.mxu3 %v228_v6 }
  0x19   :  { %355 = vmatmul.msk.f32.gmra.mxu0 %vm53_vm1, %v44_v8  ;;  %v226_v8 = vld [vmem:[%s651_s8 + $0x38] sm:$0xff]  ;;  %246 = vmatpush.msra.mxu3 %v227_v7 }
  0x1b   :  { %247 = vmatpush.msra.mxu3 %v226_v8 }
  0x1d   :  { %248 = vmatpush.msra.mxu3 %v225_v9 }
  0x87   :  { %v108_v15 = vpop.f32.mrf.mxu1 }
  0x88   :  { %v113_v16 = vperm.slane %v108_v15, 0  ;;  %v112_v20 = vrot.slane %v108_v15, 1 }
  0x8a   :  { %v114_v22 = vperm.slane %v112_v20, 0 }
  0x8e   :  { %v77_v18 = vpop.f32.mrf.mxu0 }
  0x8f   :  { %v117_v19 = vadd.f32 %v113_v16, %v77_v18  ;;  %v219_v16 = vld [vmem:[%s651_s8] sm:$0xff] }
  0x90   :  { %v40_v18 = vld [vmem:[%s643_s0] sm:$0x3]  ;;  %s439_s0 = smov [#allocation4]  }
  0x91   :  { %v123_v21 = vadd.f32 %v365_v17, %v117_v19 }
  0x93   :  { %367 = vtanh.f32 %v123_v21 }
  0x96   :  { %v80_v23 = vpop.f32.mrf.mxu0 }
  0x97   :  { %v118_v24 = vadd.f32 %v114_v22, %v80_v23  ;;  %v366_v23 = vld [vmem:[%s652_s9] ss:$0 sm:$0xff]  ;;  %s336_s9 = sshll.u32 %s439_s0, 4  ;;  %s337_s9 = int_to_ptr.vmem [resolvable:$true] %s336_s9 }
  0x99   :  { %v368_v25 = vpop.eup %367  ;;  %v124_v26 = vadd.f32 %v365_v17, %v118_v24  ;;  %v42_v17 = vld [vmem:[%s645_s2] sm:$0x3]  ;;  %s438_s2 = smov 64  }
  0x9a   :  { %v127_v27 = vsel %vm87_vm0, %v368_v25, 0.0 }
  0x9b   :  { %369 = vtanh.f32 %v124_v26  ;;  %128 = vadd.xlane.f32.xlu0 %v127_v27 }
  0xa1   :  { %v370_v28 = vpop.eup %369 }
  0xa2   :  { %v130_v29 = vsel %vm87_vm0, %v370_v28, 0.0 }
  0xa3   :  { %131 = vadd.xlane.f32.xlu0 %v130_v29 }
  0xb7   :  { %213 = vrot.lane.b32.xlu0 %v41_v10, %s435_s14  ;;  %v224_v10 = vld [vmem:[%s651_s8 + $0x28] sm:$0xff] }
  0xb8   :  { %249 = vmatpush.msra.mxu3 %v224_v10 }
  0xba   :  { %250 = vmatpush.msra.mxu3 %v223_v11 }
  0xbc   :  { %251 = vmatpush.msra.mxu3 %v222_v12 }
  0xbe   :  { %252 = vmatpush.msra.mxu3 %v221_v13 }
  0xc0   :  { %253 = vmatpush.msra.mxu3 %v220_v14 }
  0xc2   :  { %254 = vmatpush.msra.mxu3 %v219_v16 }
 0x10e   :  { %v129_v30 = vpop.xlane.xlu0 %128 }
 0x10f   :  { %v139_v35 = vperm.slane %v129_v30, %v138_v32 }
 0x116   :  { %v132_v34 = vpop.xlane.xlu0 %131 }
 0x117   :  { %v140_v36 = vperm.slane %v132_v34, %v138_v32 }
 0x119   :  { %v142_v37 = vsel %vm141_vm2, %v140_v36, %v139_v35 }
 0x11a   :  { %v144_v38 = vsel %vm134_vm3, -1e+09, %v142_v37 }
 0x11b   :  { %v146_v39 = vsel %vm145_vm4, %v144_v38, -inf }
 0x11c   :  { %147 = vmax.xlane.f32.xlu1 %v146_v39 }
 0x129   :  { %v214_v19 = vpop.permute.xlu0 %213 }
 0x18f   :  { %v148_v40 = vpop.xlane.xlu1 %147 }
 0x190   :  { %v149_v41 = vsub.f32 %v144_v38, %v148_v40 }
 0x192   :  { %v150_v42 = vmul.f32 1.442695, %v149_v41 }
 0x194   :  { %371 = vpow2.f32 %v150_v42 }
 0x19a   :  { %v372_v43 = vpop.eup %371 }
 0x19b   :  { %v152_v44 = vsel %vm145_vm4, %v372_v43, 0.0  ;;  %vm304_vm4 = vcmask 254976  }
 0x19c   :  { %153 = vadd.xlane.f32.xlu1 %v152_v44 }
 0x20f   :  { %v154_v45 = vpop.xlane.xlu1 %153 }
 0x210   :  { %373 = vrcp.f32 %v154_v45  ;;  %v166_v49 = vand.u32 2147483648, %v154_v45  ;;  %v164_v51 = vand.u32 2147483647, %v154_v45  ;;  %vm160_vm6 = vweird.f32 %v154_v45 }
 0x212   :  { %v167_v53 = vor.u32 1.1754944e-38, %v166_v49  ;;  %vm165_vm8 = vcmp.eq.f32.partialorder %v164_v51, 8.507059e+37 }
 0x216   :  { %v374_v46 = vpop.eup %373 }
 0x217   :  { %v156_v47 = vmul.f32 %v374_v46, %v154_v45  ;;  %vm161_vm5 = vweird.f32 %v374_v46 }
 0x218   :  { %vm162_vm7 = vmor %vm160_vm6, %vm161_vm5 }
 0x219   :  { %v157_v48 = vsub.f32 1.0, %v156_v47 }
 0x21b   :  { %v158_v50 = vmul.f32 %v374_v46, %v157_v48 }
 0x21d   :  { %v159_v52 = vadd.f32 %v374_v46, %v158_v50 }
 0x21f   :  { %v163_v54 = vsel %vm162_vm7, %v374_v46, %v159_v52 }
 0x220   :  { %v168_v55 = vsel %vm165_vm8, %v167_v53, %v163_v54 }
 0x221   :  { %v169_v56 = vmul.f32 %v372_v43, %v168_v55 }
 0x223   :  { %179 = vrot.lane.b32.xlu2 %v169_v56, %s436_s4 }
 0x27d   :  { %v180_v61 = vpop.permute.xlu2 %179 }
 0x27e   :  { %v183_v62 = vsel %vm182_vm11, %v169_v56, %v180_v61 }
 0x27f   :  { %v184_v63 = vsel %vm177_vm12, %v183_v62, 0.0 }
 0x280   :  { %357 = vmatmul.msk.f32.vlgmr.msra.gmra.mxu2 %vm185_vm13, %v184_v63 }
 0x303   :  { %v206_v15 = vpop.f32.mrf.mxu2 }
 0x304   :  { %210 = vrot.lane.b32.xlu2 %v206_v15, %s437_s22 }
 0x30c   :  { %280 = vrot.lane.b32.xlu2 %v42_v17, %s437_s22 }
 0x35e   :  { %v617_v20 = vpop.permute.xlu2 %210 }
 0x35f   :  { %v216_v21 = vsel %vm87_vm0, %v40_v18, %v617_v20 }
 0x360   :  { %v218_v22 = vsel %vm217_vm14, %v216_v21, %v214_v19 }
 0x361   :  { %255 = vmatmul.f32.vlgmr.msra.gmra.mxu3 %v218_v22 }
 0x366   :  { %v281_v42 = vpop.permute.xlu2 %280 }
 0x3e4   :  { %v256_v24 = vpop.f32.mrf.mxu3 }
 0x3e5   :  { %v257_v25 = vadd.f32 %v366_v23, %v256_v24 }
 0x3e7   :  { %375 = vtanh.f32 %v257_v25  ;;  %v358_v27 = vmul.f32 -1.442695, %v257_v25 }
 0x3e9   :  { %377 = vpow2.f32 %v358_v27 }
 0x3ed   :  { %v376_v26 = vpop.eup %375 }
 0x3ee   :  { %285 = vrot.lane.b32.xlu1 %v376_v26, %s438_s2 }
 0x3ef   :  { %v378_v28 = vpop.eup %377 }
 0x3f0   :  { %v262_v29 = vadd.f32 1.0, %v378_v28 }
 0x3f2   :  { %379 = vrcp.f32 %v262_v29  ;;  %v274_v35 = vand.u32 2147483648, %v262_v29  ;;  %vm268_vm1 = vweird.f32 %v262_v29  ;;  %v272_v36 = vand.u32 2147483647, %v262_v29 }
 0x3f4   :  { %v275_v38 = vor.u32 1.1754944e-38, %v274_v35  ;;  %vm273_vm3 = vcmp.eq.f32.partialorder %v272_v36, 8.507059e+37 }
 0x3f6   :  { %312 = vrot.lane.b32.xlu1 %v40_v18, %s435_s14 }
 0x3f8   :  { %v380_v30 = vpop.eup %379 }
 0x3f9   :  { %v264_v31 = vmul.f32 %v380_v30, %v262_v29  ;;  %vm269_vm15 = vweird.f32 %v380_v30 }
 0x3fa   :  { %vm270_vm2 = vmor %vm268_vm1, %vm269_vm15 }
 0x3fb   :  { %v265_v32 = vsub.f32 1.0, %v264_v31 }
 0x3fd   :  { %v266_v33 = vmul.f32 %v380_v30, %v265_v32 }
 0x3ff   :  { %v267_v34 = vadd.f32 %v380_v30, %v266_v33 }
 0x401   :  { %v271_v37 = vsel %vm270_vm2, %v380_v30, %v267_v34 }
 0x402   :  { %v276_v39 = vsel %vm273_vm3, %v275_v38, %v271_v37 }
 0x403   :  { %v283_v43 = vmul.f32 %v281_v42, %v276_v39 }
 0x460   :  { %v286_v40 = vpop.permute.xlu1 %285 }
 0x461   :  { %v288_v41 = vmul.f32 %v286_v40, %v276_v39 }
 0x463   :  { %290 = vrot.lane.b32.xlu2 %v288_v41, %s437_s22 }
 0x468   :  { %v313_v50 = vpop.permute.xlu1 %312 }
 0x4bd   :  { %v291_v44 = vpop.permute.xlu2 %290 }
 0x4be   :  { %v293_v45 = vadd.f32 %v291_v44, %v283_v43 }
 0x4c0   :  { %381 = vtanh.f32 %v293_v45 }
 0x4c6   :  { %v382_v46 = vpop.eup %381 }
 0x4c7   :  { %296 = vrot.lane.b32.xlu2 %v382_v46, %s438_s2 }
 0x4cf   :  { %307 = vrot.lane.b32.xlu2 %v293_v45, %s435_s14 }
 0x521   :  { %v297_v47 = vpop.permute.xlu2 %296 }
 0x522   :  { %v299_v48 = vmul.f32 %v297_v47, %v276_v39 }
 0x524   :  { %301 = vrot.lane.b32.xlu0 %v299_v48, %s437_s22 }
 0x529   :  { %v308_v49 = vpop.permute.xlu2 %307 }
 0x52a   :  { %310 = vst.msk [vmem:[#allocation4] sm:$0x3] %vm304_vm4, %v308_v49 }
 0x52b   :  { %341 = dma.vmem_to_hbm [thread:$0]  %s337_s9, 32, %s339_s30, [#allocation5]  }
 0x596   :  { %v302_v51 = vpop.permute.xlu0 %301 }
 0x597   :  { %305 = vst.msk [vmem:[#allocation2] sm:$0x3] %vm304_vm4, %v302_v51  ;;  %v315_v52 = vsel %vm87_vm0, %v302_v51, %v617_v20 }
 0x598   :  { %v316_v53 = vsel %vm217_vm14, %v315_v52, %v313_v50  ;;  %330 = dma.vmem_to_hbm [thread:$0]  %s326_s13, 32, %s328_s7, [#allocation3]  }
 0x599   :  { %317 = vst [vmem:[%s653_s10] sm:$0x3] %v316_v53 }
 0x59a   :  { %431 = dma.done.wait [#allocation3], 32  }
 0x59b   :  { %432 = vsyncadd [#allocation3], 4294967264 }
 0x59c   :  { %433 = dma.done.wait [#allocation5], 32  }
 0x59d   :  { %434 = vsyncadd [#allocation5], 4294967264 }
 0x59e   :  { %352 = vsyncpa [#allocation3], 1 }
 0x59f   :  { %353 = vsyncpa [#allocation5], 1 }

</bundles_post_ra>
